<compile_context>
chip_gen: v5e
topology: v5e:2x2
jax: 0.10.0
libtpu: 0.0.40
codegen_flags: <defaults>
</compile_context>

<pallas_src>
import jax
import jax.numpy as jnp
from jax.experimental import pallas as pl
from jax.experimental.pallas import tpu as pltpu


def encoder_kernel(x_ref, w1_ref, b1_ref, w2_ref, b2_ref, out_ref):
    # fc1 + ReLU: bf16 operands on the MXU, f32 accumulation, f32 bias add.
    h = jnp.dot(x_ref[...], w1_ref[...], preferred_element_type=jnp.float32)
    h = jnp.maximum(h + b1_ref[...], 0.0)
    # Fused heads: one [H, 2L] matmul -> [mu | logvar] slab.
    y = jnp.dot(h.astype(jnp.bfloat16), w2_ref[...],
                preferred_element_type=jnp.float32)
    out_ref[...] = (y + b2_ref[...]).astype(out_ref.dtype)


def _round_up(x, m):
    return (x + m - 1) // m * m


def _choose_tile_b(b_padded, max_tile_b):
    # Small batch -> single grid step (kill per-step overhead).
    if b_padded <= max_tile_b:
        return b_padded
    # Large batch -> biggest sublane-aligned tile <= max_tile_b that divides
    # the padded batch, keeping >= 2 grid steps (v7x has 2 TensorCores).
    start = (min(max_tile_b, b_padded // 2) // 8) * 8
    for tb in range(start, 0, -8):
        if b_padded % tb == 0:
            return tb
    return 8  # b_padded is a multiple of 8, so this always divides


def encoder_forward(x, w1, b1, w21, b21, w22, b22, *, max_tile_b=512):
    """x:[B,D_in] f32; w*: stored transposed [in,out]; b*: [1,out]."""
    B, D_in = x.shape
    H = w1.shape[1]
    L = w21.shape[1]

    # --- head fusion (wrapper-side, cheap) ------------------------------
    w2 = jnp.concatenate([w21, w22], axis=1)          # [H, 2L]
    b2 = jnp.concatenate([b21, b22], axis=1)          # [1, 2L]

    # --- bf16 operands for the MXU, f32 biases --------------------------
    x_bf = x.astype(jnp.bfloat16)
    w1_bf = w1.astype(jnp.bfloat16)
    w2_bf = w2.astype(jnp.bfloat16)
    b1_f = b1.astype(jnp.float32)
    b2_f = b2.astype(jnp.float32)

    # --- pad batch to a sublane multiple so any tiling is legal ---------
    Bp = _round_up(B, 8)
    if Bp != B:
        x_bf = jnp.pad(x_bf, ((0, Bp - B), (0, 0)))

    tile_b = _choose_tile_b(Bp, max_tile_b)
    grid = (Bp // tile_b,)

    # VMEM budget estimate (double-buffered blocks) -> explicit limit with
    # headroom, clamped to stay safe on v7x (64 MiB physical).
    est = 2 * (tile_b * D_in * 2                      # x tile (bf16)
               + (D_in * H + H * 2 * L) * 2           # weights (bf16)
               + (H + 2 * L) * 4                      # biases (f32)
               + tile_b * 2 * L * 4)                  # output tile (f32)
    vmem_limit = int(min(48 * 1024 * 1024, max(16 * 1024 * 1024, 4 * est)))

    in_specs = [
        pl.BlockSpec((tile_b, D_in), lambda i: (i, 0)),   # x
        pl.BlockSpec((D_in, H),      lambda i: (0, 0)),   # W1
        pl.BlockSpec((1, H),         lambda i: (0, 0)),   # b1
        pl.BlockSpec((H, 2 * L),     lambda i: (0, 0)),   # W2 = [W21|W22]
        pl.BlockSpec((1, 2 * L),     lambda i: (0, 0)),   # b2 = [b21|b22]
    ]
    out_specs = pl.BlockSpec((tile_b, 2 * L), lambda i: (i, 0))

    out = pl.pallas_call(
        encoder_kernel,
        out_shape=jax.ShapeDtypeStruct((Bp, 2 * L), jnp.float32),
        grid=grid,
        in_specs=in_specs,
        out_specs=out_specs,
        compiler_params=pltpu.CompilerParams(
            dimension_semantics=("parallel",),
            vmem_limit_bytes=vmem_limit,
        ),
    )(x_bf, w1_bf, b1_f, w2_bf, b2_f)

    out = out[:B]                  # drop batch padding
    return out[:, :L], out[:, L:]  # mu, logvar


def init_linear_params(key, in_features, out_features):
    # PyTorch nn.Linear default init: U(-1/sqrt(fan_in), 1/sqrt(fan_in)).
    k_w, k_b = jax.random.split(key)
    bound = 1.0 / (in_features ** 0.5)
    # Stored transposed: [in_features, out_features]
    w = jax.random.uniform(k_w, (in_features, out_features),
                           minval=-bound, maxval=bound, dtype=jnp.float32)
    b = jax.random.uniform(k_b, (1, out_features),
                           minval=-bound, maxval=bound, dtype=jnp.float32)
    return w, b


if __name__ == "__main__":
    input_dim, hidden_dim, latent_dim = 16, 32, 8
    batch = 16

    key = jax.random.PRNGKey(0)
    k_x, k1, k21, k22 = jax.random.split(key, 4)

    x = jax.random.normal(k_x, (batch, input_dim), dtype=jnp.float32)
    w1, b1 = init_linear_params(k1, input_dim, hidden_dim)
    w21, b21 = init_linear_params(k21, hidden_dim, latent_dim)
    w22, b22 = init_linear_params(k22, hidden_dim, latent_dim)

    mu, logvar = encoder_forward(x, w1, b1, w21, b21, w22, b22)
    jax.block_until_ready((mu, logvar))

    # Reference 1: identical mixed-precision semantics (bf16 operands, f32 acc).
    x_bf, w1_bf = x.astype(jnp.bfloat16), w1.astype(jnp.bfloat16)
    w2_bf = jnp.concatenate([w21, w22], axis=1).astype(jnp.bfloat16)
    b2_f = jnp.concatenate([b21, b22], axis=1)
    h_bf = jnp.maximum(
        jnp.dot(x_bf, w1_bf, preferred_element_type=jnp.float32) + b1, 0.0)
    y_bf = jnp.dot(h_bf.astype(jnp.bfloat16), w2_bf,
                   preferred_element_type=jnp.float32) + b2_f
    assert jnp.allclose(mu, y_bf[:, :latent_dim], atol=1e-4, rtol=1e-4)
    assert jnp.allclose(logvar, y_bf[:, latent_dim:], atol=1e-4, rtol=1e-4)

    # Reference 2: pure f32 PyTorch-equivalent forward (looser tol for bf16).
    h_f32 = jnp.maximum(x @ w1 + b1, 0.0)
    mu_f32 = h_f32 @ w21 + b21
    lv_f32 = h_f32 @ w22 + b22
    assert jnp.allclose(mu, mu_f32, atol=7.5e-2, rtol=7.5e-2)
    assert jnp.allclose(logvar, lv_f32, atol=7.5e-2, rtol=7.5e-2)

    print("KERNEL_OK")
</pallas_src>

<mosaic_0001>
module attributes {stable_mosaic.version = 11 : i64} {
  func.func @encoder_kernel(%arg0: i32, %arg1: memref<16x16xbf16, #tpu.memory_space<vmem>>, %arg2: memref<16x32xbf16, #tpu.memory_space<vmem>>, %arg3: memref<1x32xf32, #tpu.memory_space<vmem>>, %arg4: memref<32x16xbf16, #tpu.memory_space<vmem>>, %arg5: memref<1x16xf32, #tpu.memory_space<vmem>>, %arg6: memref<16x16xf32, #tpu.memory_space<vmem>>) attributes {dimension_semantics = [#tpu.dimension_semantics<parallel>], iteration_bounds = array<i64: 1>, scalar_prefetch = 0 : i64, scratch_operands = 0 : i64, tpu.core_type = #tpu.core_type<tc>, window_params = [{transform_indices = @transform_0, window_bounds = array<i64: 16, 16>}, {pipeline_mode = #tpu.pipeline_mode<synchronous>, transform_indices = @transform_1, window_bounds = array<i64: 16, 32>}, {pipeline_mode = #tpu.pipeline_mode<synchronous>, transform_indices = @transform_2, window_bounds = array<i64: 1, 32>}, {pipeline_mode = #tpu.pipeline_mode<synchronous>, transform_indices = @transform_3, window_bounds = array<i64: 32, 16>}, {pipeline_mode = #tpu.pipeline_mode<synchronous>, transform_indices = @transform_4, window_bounds = array<i64: 1, 16>}, {transform_indices = @transform_5, window_bounds = array<i64: 16, 16>}]} {
    %c0 = arith.constant 0 : index
    %c0_0 = arith.constant 0 : index
    %0 = vector.load %arg1[%c0, %c0_0] : memref<16x16xbf16, #tpu.memory_space<vmem>>, vector<16x16xbf16>
    %c0_1 = arith.constant 0 : index
    %c0_2 = arith.constant 0 : index
    %1 = vector.load %arg2[%c0_1, %c0_2] : memref<16x32xbf16, #tpu.memory_space<vmem>>, vector<16x32xbf16>
    %cst = arith.constant dense<0.000000e+00> : vector<16x32xf32>
    %2 = tpu.matmul %0, %1, %cst {dimension_numbers = #tpu.dot_dimension_numbers<[1], [0], [0], [1], [0, 0, 1, 1], [], []>} : vector<16x16xbf16>, vector<16x32xbf16>, vector<16x32xf32> -> vector<16x32xf32>
    %c0_3 = arith.constant 0 : index
    %c0_4 = arith.constant 0 : index
    %3 = vector.load %arg3[%c0_3, %c0_4] : memref<1x32xf32, #tpu.memory_space<vmem>>, vector<1x32xf32>
    %4 = vector.broadcast %3 : vector<1x32xf32> to vector<16x32xf32>
    %5 = arith.addf %2, %4 : vector<16x32xf32>
    %cst_5 = arith.constant 0.000000e+00 : f32
    %6 = vector.broadcast %cst_5 : f32 to vector<16x32xf32>
    %7 = arith.maximumf %5, %6 : vector<16x32xf32>
    %8 = arith.truncf %7 : vector<16x32xf32> to vector<16x32xbf16>
    %c0_6 = arith.constant 0 : index
    %c0_7 = arith.constant 0 : index
    %9 = vector.load %arg4[%c0_6, %c0_7] : memref<32x16xbf16, #tpu.memory_space<vmem>>, vector<32x16xbf16>
    %cst_8 = arith.constant dense<0.000000e+00> : vector<16x16xf32>
    %10 = tpu.matmul %8, %9, %cst_8 {dimension_numbers = #tpu.dot_dimension_numbers<[1], [0], [0], [1], [0, 0, 1, 1], [], []>} : vector<16x32xbf16>, vector<32x16xbf16>, vector<16x16xf32> -> vector<16x16xf32>
    %c0_9 = arith.constant 0 : index
    %c0_10 = arith.constant 0 : index
    %11 = vector.load %arg5[%c0_9, %c0_10] : memref<1x16xf32, #tpu.memory_space<vmem>>, vector<1x16xf32>
    %12 = vector.broadcast %11 : vector<1x16xf32> to vector<16x16xf32>
    %13 = arith.addf %10, %12 : vector<16x16xf32>
    %c0_11 = arith.constant 0 : index
    %c0_12 = arith.constant 0 : index
    %14 = vector.load %arg6[%c0_11, %c0_12] : memref<16x16xf32, #tpu.memory_space<vmem>>, vector<16x16xf32>
    tpu.vector_store %arg6[%c0_11, %c0_12], %13 {strides = array<i32>} : memref<16x16xf32, #tpu.memory_space<vmem>>, vector<16x16xf32>,
    return
  }
  func.func @transform_0(%arg0: i32) -> (i32, i32) {
    %c0_i32 = arith.constant 0 : i32
    %c0_i32_0 = arith.constant 0 : i32
    return %arg0, %c0_i32 : i32, i32
  }
  func.func @transform_1(%arg0: i32) -> (i32, i32) {
    %c0_i32 = arith.constant 0 : i32
    %c0_i32_0 = arith.constant 0 : i32
    %c0_i32_1 = arith.constant 0 : i32
    return %c0_i32, %c0_i32_0 : i32, i32
  }
  func.func @transform_2(%arg0: i32) -> (i32, i32) {
    %c0_i32 = arith.constant 0 : i32
    %c0_i32_0 = arith.constant 0 : i32
    %c0_i32_1 = arith.constant 0 : i32
    return %c0_i32, %c0_i32_0 : i32, i32
  }
  func.func @transform_3(%arg0: i32) -> (i32, i32) {
    %c0_i32 = arith.constant 0 : i32
    %c0_i32_0 = arith.constant 0 : i32
    %c0_i32_1 = arith.constant 0 : i32
    return %c0_i32, %c0_i32_0 : i32, i32
  }
  func.func @transform_4(%arg0: i32) -> (i32, i32) {
    %c0_i32 = arith.constant 0 : i32
    %c0_i32_0 = arith.constant 0 : i32
    %c0_i32_1 = arith.constant 0 : i32
    return %c0_i32, %c0_i32_0 : i32, i32
  }
  func.func @transform_5(%arg0: i32) -> (i32, i32) {
    %c0_i32 = arith.constant 0 : i32
    %c0_i32_0 = arith.constant 0 : i32
    return %arg0, %c0_i32 : i32, i32
  }
}

</mosaic_0001>

<bundles_post_ra>
// kernel: tpu_custom_call.1
= control target key start
LH: loop header
LB: loop body
LE: loop exit
PB: predicated region body
PF: predicated region fallthrough
CT: control target
= control target key end

     0   :  { %s230_s0 = inlined_call_operand.vmem [shape: bf16[16,16], index: 0, kind: input, shape index: {}]   ;;  %s231_s1 = inlined_call_operand.vmem [shape: bf16[16,32], index: 1, kind: input, shape index: {}]   ;;  %s232_s2 = inlined_call_operand.vmem [shape: f32[1,32], index: 2, kind: input, shape index: {}]   ;;  %s233_s3 = inlined_call_operand.vmem [shape: bf16[32,16], index: 3, kind: input, shape index: {}]   ;;  %s234_s4 = inlined_call_operand.vmem [shape: f32[1,16], index: 4, kind: input, shape index: {}]   ;;  %s235_s5 = inlined_call_operand.hbm [shape: f32[16,16], index: 5, kind: output, shape index: {}]  }
   0x1   :  { %v139_v0 = vld [vmem:[%s231_s1] sm:$0xff] }
   0x2   :  { %v138_v1 = vld [vmem:[%s230_s0] sm:$0xff] }
   0x3   :  { %10 = vsyncpa [#allocation3], 0  ;;  %52 = vmatpush.bf16.msra.mxu0 %v139_v0  ;;  %vm41_vm0 = vcmask 130048   ;;  %v141_v2 = vld [vmem:[%s233_s3 + $0x8] sm:$0xff]  ;;  %v140_v3 = vld [vmem:[%s233_s3] sm:$0xff]  ;;  %vm82_vm1 = vcmask 261120  }
   0x4   :  { %92 = vmatpush.bf16.msra.mxu1 %v141_v2  ;;  %v145_v5 = vld [vmem:[%s232_s2] ss:$0 sm:$0xff]  ;;  %s173_s3 = smov [#allocation2]   ;;  %s108_s30 = sshll.u32 %s235_s5, 4  ;;  %s109_s30 = int_to_ptr.hbm [resolvable:$true] %s108_s30 }
   0x5   :  { %v146_v12 = vld [vmem:[%s234_s4] ss:$0 sm:$0xff]  ;;  %s106_s28 = sshll.u32 %s173_s3, 4  ;;  %s174_s6 = smov 128   ;;  %s107_s28 = int_to_ptr.vmem [resolvable:$true] %s106_s28 }
   0x6   :  { %128 = vmatmul.msk.bf16.vlgmr.msra.gmra.mxu0 %vm41_vm0, %v138_v1  ;;  %s175_s7 = smov 8  }
   0x8   :  { %93 = vmatpush.bf16.msra.mxu1 %v140_v3 }
  0x83   :  { %v54_v4 = vpop.f32.mrf.mxu0 }
  0x84   :  { %v55_v6 = vadd.f32 %v145_v5, %v54_v4 }
  0x86   :  { %v59_v9 = vmax.f32 %v55_v6, 0.0 }
  0x8b   :  { %v56_v7 = vpop.f32.mrf.mxu0 }
  0x8c   :  { %v57_v8 = vadd.f32 %v145_v5, %v56_v7 }
  0x8e   :  { %v60_v10 = vmax.f32 %v57_v8, 0.0 }
  0x90   :  { %v61_v11 = vpack.c.bf16 %v60_v10, %v59_v9 }
  0x92   :  { %137 = vmatmul.msk.bf16.vlgmr.msra.gmra.mxu1 %vm82_vm1, %v61_v11 }
 0x10f   :  { %v95_v13 = vpop.f32.mrf.mxu1 }
 0x110   :  { %v96_v14 = vadd.f32 %v146_v12, %v95_v13 }
 0x112   :  { %100 = vst.msk [vmem:[#allocation2] sm:$0xff] %vm41_vm0, %v96_v14 }
 0x117   :  { %v97_v15 = vpop.f32.mrf.mxu1 }
 0x118   :  { %v98_v16 = vadd.f32 %v146_v12, %v97_v15 }
 0x11a   :  { %101 = vst.msk [vmem:[#allocation2 + $0x8] sm:$0xff] %vm41_vm0, %v98_v16 }
 0x11b   :  { %114 = dma.vmem_to_hbm [thread:$0]  %s107_s28, 256, %s109_s30, [#allocation3], %s174_s6, %s174_s6, %s175_s7  }
 0x11c   :  { %171 = dma.done.wait [#allocation3], 256  }
 0x11d   :  { %172 = vsyncadd [#allocation3], 4294967040 }
 0x11e   :  { %119 = vsyncpa [#allocation3], 1 }

</bundles_post_ra>
